<compile_context>
chip_gen: v6e
topology: v6e:2x2x1
jax: 0.10.0
libtpu: 0.0.40
codegen_flags: <defaults>
</compile_context>

<pallas_src>
import functools

import jax
import jax.numpy as jnp
from jax.experimental import pallas as pl
from jax.experimental.pallas import tpu as pltpu

BN_EPS = 1e-5


# ---------------------------------------------------------------------------
# Fused Pallas kernel: all GIN layers + outer ReLU + BN(eval) + global_add_pool
# ---------------------------------------------------------------------------
def _make_fused_gconv_kernel(num_layers, hidden, matmul_dtype):
    del hidden  # implicit in the ref shapes

    def kernel(*refs):
        a_ref, x_ref, p_ref, vecs_ref = refs[:4]
        w_refs = refs[4:4 + 2 * num_layers]
        z_out_ref = refs[4 + 2 * num_layers]
        g_out_ref = refs[5 + 2 * num_layers]

        a = a_ref[...]          # (N, N)   A + I  (GIN eps=0 identity folded in)
        vecs = vecs_ref[...]    # (4*L, H) float32: [b1, b2, bn_scale, bn_shift]*L
        z = x_ref[...]          # (N, F)   matmul dtype

        zs = []
        for l in range(num_layers):
            w1 = w_refs[2 * l][...]        # (d_in, H)
            w2 = w_refs[2 * l + 1][...]    # (H, H)
            b1 = vecs[4 * l + 0:4 * l + 1, :]
            b2 = vecs[4 * l + 1:4 * l + 2, :]
            scale = vecs[4 * l + 2:4 * l + 3, :]
            shift = vecs[4 * l + 3:4 * l + 4, :]

            # GIN aggregation: (1+eps)*x_i + sum_j x_j  ==  (A + I) @ z.
            agg = jnp.dot(a, z, preferred_element_type=jnp.float32)
            # MLP: Linear -> ReLU -> Dropout(identity in eval) -> Linear.
            h = jnp.dot(agg.astype(matmul_dtype), w1,
                        preferred_element_type=jnp.float32) + b1
            h = jnp.maximum(h, 0.0)
            h = jnp.dot(h.astype(matmul_dtype), w2,
                        preferred_element_type=jnp.float32) + b2
            # Outer F.relu, then BatchNorm1d (eval; running stats pre-folded).
            h = jnp.maximum(h, 0.0)
            h = h * scale + shift          # float32 epilogue
            zs.append(h)
            z = h.astype(matmul_dtype)

        # One lane-dense (N, L*H) store instead of L narrow masked stores.
        z_cat = jnp.concatenate(zs, axis=1)
        z_out_ref[...] = z_cat
        # global_add_pool over all layers at once: g = P @ z_cat (float32).
        g_out_ref[...] = jnp.dot(p_ref[...], z_cat,
                                 preferred_element_type=jnp.float32)

    return kernel


# ---------------------------------------------------------------------------
# GConv forward (scatter-free structure build in JAX, hot path in one kernel)
# ---------------------------------------------------------------------------
@functools.partial(jax.jit, static_argnames=("num_graphs", "matmul_dtype"))
def gconv_forward(params, x, edge_index, batch, num_graphs,
                  matmul_dtype=jnp.bfloat16):
    layers = params["layers"]
    num_layers = len(layers)
    hidden = layers[0]["w1"].shape[1]
    n = x.shape[0]

    # Scatter-free dense adjacency with the GIN identity folded in:
    #   A[i, j] = #edges j -> i  (messages x[src] aggregated into dst)
    #   A_hat   = A + I          ((1 + eps) * x_i term, eps = 0)
    src, dst = edge_index[0], edge_index[1]
    oh_dst = jax.nn.one_hot(dst, n, dtype=jnp.float32)         # (E, N)
    oh_src = jax.nn.one_hot(src, n, dtype=jnp.float32)         # (E, N)
    a_hat = oh_dst.T @ oh_src + jnp.eye(n, dtype=jnp.float32)  # (N, N)

    # Scatter-free pool matrix: P[g, i] = 1 iff batch[i] == g.
    p = (batch[None, :] ==
         jax.lax.broadcasted_iota(jnp.int32, (num_graphs, n), 0)
         ).astype(jnp.float32)

    # Fold BN running stats into (scale, shift); pack all per-layer vectors
    # (b1, b2, scale, shift) into one (4*L, H) ref (single DMA).
    vec_rows, w_args = [], []
    for layer in layers:
        inv_std = jax.lax.rsqrt(layer["bn_var"] + BN_EPS)
        scale = layer["bn_gamma"] * inv_std
        shift = layer["bn_beta"] - layer["bn_mean"] * scale
        vec_rows += [layer["b1"], layer["b2"], scale, shift]
        w_args += [layer["w1"].astype(matmul_dtype),
                   layer["w2"].astype(matmul_dtype)]
    vecs = jnp.stack(vec_rows, axis=0).astype(jnp.float32)     # (4*L, H)

    out_dim = hidden * num_layers
    kernel = _make_fused_gconv_kernel(num_layers, hidden, matmul_dtype)
    z_cat, g_cat = pl.pallas_call(
        kernel,
        out_shape=(jax.ShapeDtypeStruct((n, out_dim), jnp.float32),
                   jax.ShapeDtypeStruct((num_graphs, out_dim), jnp.float32)),
        compiler_params=pltpu.CompilerParams(
            vmem_limit_bytes=32 * 1024 * 1024),
    )(a_hat.astype(matmul_dtype), x.astype(matmul_dtype), p, vecs, *w_args)
    return z_cat, g_cat


# ---------------------------------------------------------------------------
# Plain-JAX reference (float32) for a numerical sanity check
# ---------------------------------------------------------------------------
def gconv_reference(params, x, edge_index, batch, num_graphs):
    n = x.shape[0]
    src, dst = edge_index[0], edge_index[1]
    a = jnp.zeros((n, n), jnp.float32).at[dst, src].add(1.0)
    z = x
    zs = []
    for layer in params["layers"]:
        agg = a @ z + z
        h = jnp.maximum(agg @ layer["w1"] + layer["b1"], 0.0)
        h = h @ layer["w2"] + layer["b2"]
        h = jnp.maximum(h, 0.0)
        inv_std = jax.lax.rsqrt(layer["bn_var"] + BN_EPS)
        h = (h - layer["bn_mean"]) * inv_std * layer["bn_gamma"] + layer["bn_beta"]
        zs.append(h)
        z = h
    z_cat = jnp.concatenate(zs, axis=1)
    g = jnp.zeros((num_graphs, z_cat.shape[1]), jnp.float32).at[batch].add(z_cat)
    return z_cat, g


# ---------------------------------------------------------------------------
# Deterministic parameter init (shapes from GConv.__init__)
# ---------------------------------------------------------------------------
def init_params(key, input_dim, hidden_dim, num_layers):
    layers = []
    for i in range(num_layers):
        d_in = input_dim if i == 0 else hidden_dim
        key, k1, k2 = jax.random.split(key, 3)
        bound1 = (6.0 / d_in) ** 0.5          # kaiming-uniform-ish
        bound2 = (6.0 / hidden_dim) ** 0.5
        layers.append({
            # weights stored as (in, out) so the kernel does z @ W
            "w1": jax.random.uniform(k1, (d_in, hidden_dim), jnp.float32,
                                     -bound1, bound1),
            "b1": jnp.zeros((hidden_dim,), jnp.float32),
            "w2": jax.random.uniform(k2, (hidden_dim, hidden_dim), jnp.float32,
                                     -bound2, bound2),
            "b2": jnp.zeros((hidden_dim,), jnp.float32),
            "bn_gamma": jnp.ones((hidden_dim,), jnp.float32),
            "bn_beta": jnp.zeros((hidden_dim,), jnp.float32),
            "bn_mean": jnp.zeros((hidden_dim,), jnp.float32),
            "bn_var": jnp.ones((hidden_dim,), jnp.float32),
        })
    # NOTE: GConv.project is not used in forward(); omitted.
    return {"layers": layers}


if __name__ == "__main__":
    INPUT_DIM, HIDDEN_DIM, NUM_LAYERS = 16, 32, 3
    N_NODES, N_EDGES, N_GRAPHS = 32, 64, 4

    key = jax.random.PRNGKey(0)
    key, kx, ke, kb = jax.random.split(key, 4)

    x = jax.random.normal(kx, (N_NODES, INPUT_DIM), jnp.float32)
    edge_index = jax.random.randint(ke, (2, N_EDGES), 0, N_NODES, jnp.int32)
    # contiguous, sorted graph assignment of nodes
    batch = jnp.sort(jax.random.randint(kb, (N_NODES,), 0, N_GRAPHS, jnp.int32))

    params = init_params(key, INPUT_DIM, HIDDEN_DIM, NUM_LAYERS)

    z_out, g_out = gconv_forward(params, x, edge_index, batch,
                                 num_graphs=N_GRAPHS)
    jax.block_until_ready((z_out, g_out))

    assert z_out.shape == (N_NODES, HIDDEN_DIM * NUM_LAYERS)
    assert g_out.shape == (N_GRAPHS, HIDDEN_DIM * NUM_LAYERS)

    # Numerical sanity check vs plain-JAX float32 reference (kernel uses bf16
    # matmul operands with f32 accumulation -> loose tolerance).
    z_ref, g_ref = gconv_reference(params, x, edge_index, batch, N_GRAPHS)
    assert jnp.allclose(z_out, z_ref, rtol=1e-1, atol=5e-1), \
        float(jnp.max(jnp.abs(z_out - z_ref)))
    assert jnp.allclose(g_out, g_ref, rtol=1e-1, atol=2.0), \
        float(jnp.max(jnp.abs(g_out - g_ref)))

    print("KERNEL_OK")
</pallas_src>

<mosaic_0001>
module attributes {stable_mosaic.version = 11 : i64} {
  func.func @kernel(%arg0: memref<32x32xbf16, #tpu.memory_space<vmem>>, %arg1: memref<32x16xbf16, #tpu.memory_space<vmem>>, %arg2: memref<4x32xf32, #tpu.memory_space<vmem>>, %arg3: memref<12x32xf32, #tpu.memory_space<vmem>>, %arg4: memref<16x32xbf16, #tpu.memory_space<vmem>>, %arg5: memref<32x32xbf16, #tpu.memory_space<vmem>>, %arg6: memref<32x32xbf16, #tpu.memory_space<vmem>>, %arg7: memref<32x32xbf16, #tpu.memory_space<vmem>>, %arg8: memref<32x32xbf16, #tpu.memory_space<vmem>>, %arg9: memref<32x32xbf16, #tpu.memory_space<vmem>>, %arg10: memref<32x96xf32, #tpu.memory_space<vmem>>, %arg11: memref<4x96xf32, #tpu.memory_space<vmem>>) attributes {dimension_semantics = [], scalar_prefetch = 0 : i64, scratch_operands = 0 : i64, tpu.core_type = #tpu.core_type<tc>} {
    %c0 = arith.constant 0 : index
    %c0_0 = arith.constant 0 : index
    %0 = vector.load %arg0[%c0, %c0_0] : memref<32x32xbf16, #tpu.memory_space<vmem>>, vector<32x32xbf16>
    %c0_1 = arith.constant 0 : index
    %c0_2 = arith.constant 0 : index
    %1 = vector.load %arg3[%c0_1, %c0_2] : memref<12x32xf32, #tpu.memory_space<vmem>>, vector<12x32xf32>
    %c0_3 = arith.constant 0 : index
    %c0_4 = arith.constant 0 : index
    %2 = vector.load %arg1[%c0_3, %c0_4] : memref<32x16xbf16, #tpu.memory_space<vmem>>, vector<32x16xbf16>
    %c0_5 = arith.constant 0 : index
    %c0_6 = arith.constant 0 : index
    %3 = vector.load %arg4[%c0_5, %c0_6] : memref<16x32xbf16, #tpu.memory_space<vmem>>, vector<16x32xbf16>
    %c0_7 = arith.constant 0 : index
    %c0_8 = arith.constant 0 : index
    %4 = vector.load %arg5[%c0_7, %c0_8] : memref<32x32xbf16, #tpu.memory_space<vmem>>, vector<32x32xbf16>
    %5 = vector.extract_strided_slice %1 {offsets = [0, 0], sizes = [1, 32], strides = [1, 1]} : vector<12x32xf32> to vector<1x32xf32>
    %6 = vector.extract_strided_slice %1 {offsets = [1, 0], sizes = [1, 32], strides = [1, 1]} : vector<12x32xf32> to vector<1x32xf32>
    %7 = vector.extract_strided_slice %1 {offsets = [2, 0], sizes = [1, 32], strides = [1, 1]} : vector<12x32xf32> to vector<1x32xf32>
    %8 = vector.extract_strided_slice %1 {offsets = [3, 0], sizes = [1, 32], strides = [1, 1]} : vector<12x32xf32> to vector<1x32xf32>
    %cst = arith.constant dense<0.000000e+00> : vector<32x16xf32>
    %9 = tpu.matmul %0, %2, %cst {dimension_numbers = #tpu.dot_dimension_numbers<[1], [0], [0], [1], [0, 0, 1, 1], [], []>} : vector<32x32xbf16>, vector<32x16xbf16>, vector<32x16xf32> -> vector<32x16xf32>
    %10 = arith.truncf %9 : vector<32x16xf32> to vector<32x16xbf16>
    %cst_9 = arith.constant dense<0.000000e+00> : vector<32x32xf32>
    %11 = tpu.matmul %10, %3, %cst_9 {dimension_numbers = #tpu.dot_dimension_numbers<[1], [0], [0], [1], [0, 0, 1, 1], [], []>} : vector<32x16xbf16>, vector<16x32xbf16>, vector<32x32xf32> -> vector<32x32xf32>
    %12 = vector.broadcast %5 : vector<1x32xf32> to vector<32x32xf32>
    %13 = arith.addf %11, %12 : vector<32x32xf32>
    %cst_10 = arith.constant 0.000000e+00 : f32
    %14 = vector.broadcast %cst_10 : f32 to vector<32x32xf32>
    %15 = arith.maximumf %13, %14 : vector<32x32xf32>
    %16 = arith.truncf %15 : vector<32x32xf32> to vector<32x32xbf16>
    %cst_11 = arith.constant dense<0.000000e+00> : vector<32x32xf32>
    %17 = tpu.matmul %16, %4, %cst_11 {dimension_numbers = #tpu.dot_dimension_numbers<[1], [0], [0], [1], [0, 0, 1, 1], [], []>} : vector<32x32xbf16>, vector<32x32xbf16>, vector<32x32xf32> -> vector<32x32xf32>
    %18 = vector.broadcast %6 : vector<1x32xf32> to vector<32x32xf32>
    %19 = arith.addf %17, %18 : vector<32x32xf32>
    %cst_12 = arith.constant 0.000000e+00 : f32
    %20 = vector.broadcast %cst_12 : f32 to vector<32x32xf32>
    %21 = arith.maximumf %19, %20 : vector<32x32xf32>
    %22 = vector.broadcast %7 : vector<1x32xf32> to vector<32x32xf32>
    %23 = arith.mulf %21, %22 : vector<32x32xf32>
    %24 = vector.broadcast %8 : vector<1x32xf32> to vector<32x32xf32>
    %25 = arith.addf %23, %24 : vector<32x32xf32>
    %26 = arith.truncf %25 : vector<32x32xf32> to vector<32x32xbf16>
    %c0_13 = arith.constant 0 : index
    %c0_14 = arith.constant 0 : index
    %27 = vector.load %arg6[%c0_13, %c0_14] : memref<32x32xbf16, #tpu.memory_space<vmem>>, vector<32x32xbf16>
    %c0_15 = arith.constant 0 : index
    %c0_16 = arith.constant 0 : index
    %28 = vector.load %arg7[%c0_15, %c0_16] : memref<32x32xbf16, #tpu.memory_space<vmem>>, vector<32x32xbf16>
    %29 = vector.extract_strided_slice %1 {offsets = [4, 0], sizes = [1, 32], strides = [1, 1]} : vector<12x32xf32> to vector<1x32xf32>
    %30 = vector.extract_strided_slice %1 {offsets = [5, 0], sizes = [1, 32], strides = [1, 1]} : vector<12x32xf32> to vector<1x32xf32>
    %31 = vector.extract_strided_slice %1 {offsets = [6, 0], sizes = [1, 32], strides = [1, 1]} : vector<12x32xf32> to vector<1x32xf32>
    %32 = vector.extract_strided_slice %1 {offsets = [7, 0], sizes = [1, 32], strides = [1, 1]} : vector<12x32xf32> to vector<1x32xf32>
    %cst_17 = arith.constant dense<0.000000e+00> : vector<32x32xf32>
    %33 = tpu.matmul %0, %26, %cst_17 {dimension_numbers = #tpu.dot_dimension_numbers<[1], [0], [0], [1], [0, 0, 1, 1], [], []>} : vector<32x32xbf16>, vector<32x32xbf16>, vector<32x32xf32> -> vector<32x32xf32>
    %34 = arith.truncf %33 : vector<32x32xf32> to vector<32x32xbf16>
    %cst_18 = arith.constant dense<0.000000e+00> : vector<32x32xf32>
    %35 = tpu.matmul %34, %27, %cst_18 {dimension_numbers = #tpu.dot_dimension_numbers<[1], [0], [0], [1], [0, 0, 1, 1], [], []>} : vector<32x32xbf16>, vector<32x32xbf16>, vector<32x32xf32> -> vector<32x32xf32>
    %36 = vector.broadcast %29 : vector<1x32xf32> to vector<32x32xf32>
    %37 = arith.addf %35, %36 : vector<32x32xf32>
    %cst_19 = arith.constant 0.000000e+00 : f32
    %38 = vector.broadcast %cst_19 : f32 to vector<32x32xf32>
    %39 = arith.maximumf %37, %38 : vector<32x32xf32>
    %40 = arith.truncf %39 : vector<32x32xf32> to vector<32x32xbf16>
    %cst_20 = arith.constant dense<0.000000e+00> : vector<32x32xf32>
    %41 = tpu.matmul %40, %28, %cst_20 {dimension_numbers = #tpu.dot_dimension_numbers<[1], [0], [0], [1], [0, 0, 1, 1], [], []>} : vector<32x32xbf16>, vector<32x32xbf16>, vector<32x32xf32> -> vector<32x32xf32>
    %42 = vector.broadcast %30 : vector<1x32xf32> to vector<32x32xf32>
    %43 = arith.addf %41, %42 : vector<32x32xf32>
    %cst_21 = arith.constant 0.000000e+00 : f32
    %44 = vector.broadcast %cst_21 : f32 to vector<32x32xf32>
    %45 = arith.maximumf %43, %44 : vector<32x32xf32>
    %46 = vector.broadcast %31 : vector<1x32xf32> to vector<32x32xf32>
    %47 = arith.mulf %45, %46 : vector<32x32xf32>
    %48 = vector.broadcast %32 : vector<1x32xf32> to vector<32x32xf32>
    %49 = arith.addf %47, %48 : vector<32x32xf32>
    %50 = arith.truncf %49 : vector<32x32xf32> to vector<32x32xbf16>
    %c0_22 = arith.constant 0 : index
    %c0_23 = arith.constant 0 : index
    %51 = vector.load %arg8[%c0_22, %c0_23] : memref<32x32xbf16, #tpu.memory_space<vmem>>, vector<32x32xbf16>
    %c0_24 = arith.constant 0 : index
    %c0_25 = arith.constant 0 : index
    %52 = vector.load %arg9[%c0_24, %c0_25] : memref<32x32xbf16, #tpu.memory_space<vmem>>, vector<32x32xbf16>
    %53 = vector.extract_strided_slice %1 {offsets = [8, 0], sizes = [1, 32], strides = [1, 1]} : vector<12x32xf32> to vector<1x32xf32>
    %54 = vector.extract_strided_slice %1 {offsets = [9, 0], sizes = [1, 32], strides = [1, 1]} : vector<12x32xf32> to vector<1x32xf32>
    %55 = vector.extract_strided_slice %1 {offsets = [10, 0], sizes = [1, 32], strides = [1, 1]} : vector<12x32xf32> to vector<1x32xf32>
    %56 = vector.extract_strided_slice %1 {offsets = [11, 0], sizes = [1, 32], strides = [1, 1]} : vector<12x32xf32> to vector<1x32xf32>
    %cst_26 = arith.constant dense<0.000000e+00> : vector<32x32xf32>
    %57 = tpu.matmul %0, %50, %cst_26 {dimension_numbers = #tpu.dot_dimension_numbers<[1], [0], [0], [1], [0, 0, 1, 1], [], []>} : vector<32x32xbf16>, vector<32x32xbf16>, vector<32x32xf32> -> vector<32x32xf32>
    %58 = arith.truncf %57 : vector<32x32xf32> to vector<32x32xbf16>
    %cst_27 = arith.constant dense<0.000000e+00> : vector<32x32xf32>
    %59 = tpu.matmul %58, %51, %cst_27 {dimension_numbers = #tpu.dot_dimension_numbers<[1], [0], [0], [1], [0, 0, 1, 1], [], []>} : vector<32x32xbf16>, vector<32x32xbf16>, vector<32x32xf32> -> vector<32x32xf32>
    %60 = vector.broadcast %53 : vector<1x32xf32> to vector<32x32xf32>
    %61 = arith.addf %59, %60 : vector<32x32xf32>
    %cst_28 = arith.constant 0.000000e+00 : f32
    %62 = vector.broadcast %cst_28 : f32 to vector<32x32xf32>
    %63 = arith.maximumf %61, %62 : vector<32x32xf32>
    %64 = arith.truncf %63 : vector<32x32xf32> to vector<32x32xbf16>
    %cst_29 = arith.constant dense<0.000000e+00> : vector<32x32xf32>
    %65 = tpu.matmul %64, %52, %cst_29 {dimension_numbers = #tpu.dot_dimension_numbers<[1], [0], [0], [1], [0, 0, 1, 1], [], []>} : vector<32x32xbf16>, vector<32x32xbf16>, vector<32x32xf32> -> vector<32x32xf32>
    %66 = vector.broadcast %54 : vector<1x32xf32> to vector<32x32xf32>
    %67 = arith.addf %65, %66 : vector<32x32xf32>
    %cst_30 = arith.constant 0.000000e+00 : f32
    %68 = vector.broadcast %cst_30 : f32 to vector<32x32xf32>
    %69 = arith.maximumf %67, %68 : vector<32x32xf32>
    %70 = vector.broadcast %55 : vector<1x32xf32> to vector<32x32xf32>
    %71 = arith.mulf %69, %70 : vector<32x32xf32>
    %72 = vector.broadcast %56 : vector<1x32xf32> to vector<32x32xf32>
    %73 = arith.addf %71, %72 : vector<32x32xf32>
    %74 = tpu.concatenate %25, %49, %73 in 1 : vector<32x32xf32>, vector<32x32xf32>, vector<32x32xf32> -> vector<32x96xf32>
    %c0_31 = arith.constant 0 : index
    %c0_32 = arith.constant 0 : index
    %75 = vector.load %arg10[%c0_31, %c0_32] : memref<32x96xf32, #tpu.memory_space<vmem>>, vector<32x96xf32>
    tpu.vector_store %arg10[%c0_31, %c0_32], %74 {strides = array<i32>} : memref<32x96xf32, #tpu.memory_space<vmem>>, vector<32x96xf32>,
    %c0_33 = arith.constant 0 : index
    %c0_34 = arith.constant 0 : index
    %76 = vector.load %arg2[%c0_33, %c0_34] : memref<4x32xf32, #tpu.memory_space<vmem>>, vector<4x32xf32>
    %cst_35 = arith.constant dense<0.000000e+00> : vector<4x96xf32>
    %77 = tpu.matmul %76, %74, %cst_35 {dimension_numbers = #tpu.dot_dimension_numbers<[1], [0], [0], [1], [0, 0, 1, 1], [], []>} : vector<4x32xf32>, vector<32x96xf32>, vector<4x96xf32> -> vector<4x96xf32>
    %c0_36 = arith.constant 0 : index
    %c0_37 = arith.constant 0 : index
    %78 = vector.load %arg11[%c0_36, %c0_37] : memref<4x96xf32, #tpu.memory_space<vmem>>, vector<4x96xf32>
    tpu.vector_store %arg11[%c0_36, %c0_37], %77 {strides = array<i32>} : memref<4x96xf32, #tpu.memory_space<vmem>>, vector<4x96xf32>,
    return
  }
}

</mosaic_0001>

<bundles_post_ra>
// kernel: gconv_forward.1
= control target key start
LH: loop header
LB: loop body
LE: loop exit
PB: predicated region body
PF: predicated region fallthrough
CT: control target
= control target key end

     0   :  { %17 = vsyncpa [#allocation3], 0  ;;  %vm78_vm0 = vcmask 261120   ;;  %s1362_s0 = inlined_call_operand.vmem [shape: bf16[32,32], index: 0, kind: input, shape index: {}]   ;;  %s1363_s1 = inlined_call_operand.vmem [shape: bf16[32,16], index: 1, kind: input, shape index: {}]   ;;  %s1364_s2 = inlined_call_operand.vmem [shape: f32[4,32], index: 2, kind: input, shape index: {}]   ;;  %s1365_s3 = inlined_call_operand.vmem [shape: f32[12,32], index: 3, kind: input, shape index: {}]   ;;  %s1366_s4 = inlined_call_operand.vmem [shape: bf16[16,32], index: 4, kind: input, shape index: {}]   ;;  %s1367_s5 = inlined_call_operand.vmem [shape: bf16[32,32], index: 5, kind: input, shape index: {}]   ;;  %s1368_s6 = inlined_call_operand.vmem [shape: bf16[32,32], index: 6, kind: input, shape index: {}]   ;;  %s1369_s7 = inlined_call_operand.vmem [shape: bf16[32,32], index: 7, kind: input, shape index: {}]   ;;  %s1370_s8 = inlined_call_operand.vmem [shape: bf16[32,32], index: 8, kind: input, shape index: {}]   ;;  %s1371_s9 = inlined_call_operand.vmem [shape: bf16[32,32], index: 9, kind: input, shape index: {}]   ;;  %s1372_s10 = inlined_call_operand.hbm [shape: f32[32,96], index: 10, kind: output, shape index: {0}]   ;;  %s1373_s11 = inlined_call_operand.hbm [shape: f32[4,96], index: 11, kind: output, shape index: {1}]  }
   0x1   :  { %v1072_v0 = vld [vmem:[%s1363_s1 + $0x8] sm:$0xff]   ;;  %v1073_v1 = vld [vmem:[%s1363_s1] sm:$0xff]  }
   0x2   :  { %983 = vmatprep.subr.bf16.mxu0 %v1072_v0  ;;  %v1208_v2 = vld [vmem:[%s1362_s0] sm:$0xff]   ;;  %v1215_v3 = vld [vmem:[%s1362_s0 + $0x8] sm:$0xff]  }
   0x3   :  { %984 = vmatpush3.bf16.msra.mxu0 %v1072_v0  ;;  %987 = vmatprep.mubr.msk.bf16.mxu0 %vm78_vm0, %v1208_v2 }
   0x4   :  { %985 = vmatprep.subr.bf16.mxu0 %v1073_v1 }
   0x7   :  { %986 = vmatpush3.bf16.msra.mxu0 %v1073_v1 }
   0xa   :  { %988 = vmatmul.mubr.msk.bf16.vlgmr.msra.gmra.mxu0 %vm78_vm0, %v1215_v3 }
   0xb   :  { %1009 = vmatprep.mubr.msk.bf16.mxu0 %vm78_vm0, %v1208_v2 }
   0xc   :  { %18 = vsyncpa [#allocation5], 0  ;;  %v1076_v4 = vld [vmem:[%s1366_s4] sm:$0xff]   ;;  %vm146_vm1 = vcmask 130048   ;;  %v1077_v11 = vld [vmem:[%s1367_s5 + $0x8] sm:$0xff]   ;;  %v136_v13 = vlaneseq  ;;  %vm1134_vm2 = vmmov 0  }
   0xd   :  { %991 = vmatprep.subr.bf16.mxu1 %v1076_v4  ;;  %v1078_v12 = vld [vmem:[%s1367_s5] sm:$0xff]   ;;  %v1079_v60 = vld [vmem:[%s1368_s6 + $0x8] sm:$0xff]   ;;  %vm793_vm3 = vcmask 523264   ;;  %vm798_vm4 = vcmask 785408   ;;  %s1135_s0 = smov [#allocation2]  }
   0xe   :  { %992 = vmatpush3.bf16.msra.mxu1 %v1076_v4  ;;  %v1230_v14 = vshrl.u32 %v136_v13, 7  ;;  %v1236_v16 = vld [vmem:[%s1365_s3] sm:$0xff]  ;;  %s884_s26 = sshll.u32 %s1135_s0, 4  ;;  %s885_s26 = int_to_ptr.vmem [resolvable:$true] %s884_s26 }
   0xf   :  { %997 = vmatprep.subr.bf16.mxu1 %v1077_v11  ;;  %v1080_v61 = vld [vmem:[%s1368_s6] sm:$0xff]   ;;  %s1087_s27 = scalar_lea.vmem %s885_s26, 512  ;;  %p1092_p1 = scmp.lt.s32.totalorder %s885_s26, %s885_s26 }
  0x10   :  { %v138_v15 = vsub.s32 0, %v1230_v14  ;;  %v210_v32 = vsub.s32 1, %v1230_v14  ;;  %v285_v34 = vsub.s32 2, %v1230_v14  ;;  %v293_v40 = vsub.s32 3, %v1230_v14  ;;  %p1088_p0 = scmp.ne.s32.totalorder %s885_s26, %s1087_s27  ;;  %p1093_p2 = scmp.lt.s32.totalorder %s1087_s27, %s1087_s27 }
  0x12   :  { %v139_v18 = vrot.slane %v1236_v16, %v138_v15  ;;  %v211_v33 = vrot.slane %v1236_v16, %v210_v32  ;;  %v286_v39 = vrot.slane %v1236_v16, %v285_v34  ;;  %v294_v47 = vrot.slane %v1236_v16, %v293_v40  ;;  %p1094_p3 = por %p1093_p2, %p1092_p1 }
  0x14   :  { %p1095_p4 = pnand %p1094_p3, %p1088_p0 }
  0xca   :  { %v989_v5 = vpop.f32.mrf.mxu0 }
  0xcc   :  { %v119_v6 = vpop.f32.mrf.mxu0 }
  0xce   :  { %v990_v7 = vpop.f32.mrf.mxu0 }
  0xcf   :  { %v135_v10 = vpack.c.bf16 %v990_v7, %v989_v5  ;;  %v1082_v7 = vld [vmem:[%s1369_s7] sm:$0xff]  }
  0xd0   :  { %v122_v8 = vpop.f32.mrf.mxu0 }
  0xd1   :  { %v134_v9 = vpack.c.bf16 %v122_v8, %v119_v6  ;;  %v1081_v6 = vld [vmem:[%s1369_s7 + $0x8] sm:$0xff]   ;;  %v362_v8 = vsub.s32 4, %v1230_v14  ;;  %s1131_s7 = smov 32  }
  0xd3   :  { %993 = vmatprep.mubr.msk.bf16.mxu1 %vm146_vm1, %v134_v9 }
  0xd4   :  { %994 = vmatmul.mubr.msk.bf16.vlgmr.msra.gmra.mxu1 %vm146_vm1, %v135_v10  ;;  %v363_v10 = vrot.slane %v1236_v16, %v362_v8 }
  0xd5   :  { %998 = vmatpush3.bf16.msra.mxu1 %v1077_v11 }
  0xd6   :  { %999 = vmatprep.subr.bf16.mxu1 %v1078_v12 }
  0xd9   :  { %1000 = vmatpush3.bf16.msra.mxu1 %v1078_v12 }
  0xda   :  { %1013 = vmatprep.subr.bf16.mxu1 %v1079_v60 }
 0x194   :  { %v995_v17 = vpop.f32.mrf.mxu1 }
 0x195   :  { %v196_v23 = vadd.f32 %v995_v17, %v139_v18 }
 0x196   :  { %v187_v19 = vpop.f32.mrf.mxu1 }
 0x197   :  { %v188_v21 = vadd.f32 %v187_v19, %v139_v18  ;;  %v204_v29 = vmax.f32 %v196_v23, 0.0 }
 0x198   :  { %v996_v20 = vpop.f32.mrf.mxu1 }
 0x199   :  { %v199_v22 = vadd.f32 %v996_v20, %v139_v18  ;;  %v202_v27 = vmax.f32 %v188_v21, 0.0 }
 0x19a   :  { %v190_v24 = vpop.f32.mrf.mxu1 }
 0x19b   :  { %v191_v25 = vadd.f32 %v190_v24, %v139_v18  ;;  %v205_v26 = vmax.f32 %v199_v22, 0.0 }
 0x19d   :  { %v203_v28 = vmax.f32 %v191_v25, 0.0  ;;  %v207_v31 = vpack.c.bf16 %v205_v26, %v204_v29  ;;  %v439_v26 = vsub.s32 5, %v1230_v14  ;;  %v522_v29 = vsub.s32 7, %v1230_v14 }
 0x19f   :  { %v206_v30 = vpack.c.bf16 %v203_v28, %v202_v27  ;;  %v440_v27 = vrot.slane %v1236_v16, %v439_v26  ;;  %v514_v28 = vsub.s32 6, %v1230_v14  ;;  %v1132_v26 = vmov 0.0  }
 0x1a1   :  { %1001 = vmatprep.mubr.msk.bf16.mxu1 %vm78_vm0, %v206_v30 }
 0x1a2   :  { %1002 = vmatmul.mubr.msk.bf16.vlgmr.msra.gmra.mxu1 %vm78_vm0, %v207_v31 }
 0x1a3   :  { %1014 = vmatpush3.bf16.msra.mxu1 %v1079_v60  ;;  %v1083_v60 = vld [vmem:[%s1370_s8 + $0x8] sm:$0xff]  }
 0x1a4   :  { %1015 = vmatprep.subr.bf16.mxu1 %v1080_v61 }
 0x1a7   :  { %1016 = vmatpush3.bf16.msra.mxu1 %v1080_v61  ;;  %v1084_v61 = vld [vmem:[%s1370_s8] sm:$0xff]  }
 0x262   :  { %v1003_v35 = vpop.f32.mrf.mxu1 }
 0x263   :  { %v273_v36 = vadd.f32 %v1003_v35, %v211_v33 }
 0x264   :  { %v264_v37 = vpop.f32.mrf.mxu1 }
 0x265   :  { %v281_v38 = vmax.f32 %v273_v36, 0.0  ;;  %v265_v41 = vadd.f32 %v264_v37, %v211_v33 }
 0x266   :  { %v1004_v42 = vpop.f32.mrf.mxu1 }
 0x267   :  { %v279_v43 = vmax.f32 %v265_v41, 0.0  ;;  %v276_v44 = vadd.f32 %v1004_v42, %v211_v33  ;;  %v289_v46 = vmul.f32 %v286_v39, %v281_v38  ;;  %v523_v38 = vrot.slane %v1236_v16, %v522_v29 }
 0x268   :  { %v267_v45 = vpop.f32.mrf.mxu1 }
 0x269   :  { %v282_v48 = vmax.f32 %v276_v44, 0.0  ;;  %v268_v49 = vadd.f32 %v267_v45, %v211_v33  ;;  %v287_v50 = vmul.f32 %v286_v39, %v279_v43  ;;  %v1255_v53 = vadd.f32 %v294_v47, %v289_v46 }
 0x26a   :  { %v515_v33 = vrot.slane %v1236_v16, %v514_v28 }
 0x26b   :  { %v290_v51 = vmul.f32 %v286_v39, %v282_v48  ;;  %v280_v52 = vmax.f32 %v268_v49, 0.0  ;;  %v1259_v56 = vadd.f32 %v294_v47, %v287_v50 }
 0x26d   :  { %v1257_v54 = vadd.f32 %v294_v47, %v290_v51  ;;  %v288_v55 = vmul.f32 %v286_v39, %v280_v52 }
 0x26f   :  { %v1261_v57 = vadd.f32 %v294_v47, %v288_v55  ;;  %v300_v58 = vpack.c.bf16 %v1257_v54, %v1255_v53 }
 0x271   :  { %1005 = vmatprep.subr.bf16.mxu0 %v300_v58  ;;  %v299_v59 = vpack.c.bf16 %v1261_v57, %v1259_v56 }
 0x272   :  { %1006 = vmatpush3.bf16.msra.mxu0 %v300_v58 }
 0x273   :  { %1007 = vmatprep.subr.bf16.mxu0 %v299_v59 }
 0x276   :  { %1008 = vmatpush3.bf16.msra.mxu0 %v299_v59 }
 0x277   :  { %1021 = vmatprep.subr.bf16.mxu0 %v1081_v6 }
 0x279   :  { %1010 = vmatmul.mubr.msk.bf16.vlgmr.msra.gmra.mxu0 %vm78_vm0, %v1215_v3 }
 0x27a   :  { %1022 = vmatpush3.bf16.msra.mxu0 %v1081_v6  ;;  %v1086_v6 = vld [vmem:[%s1371_s9] sm:$0xff]  }
 0x27b   :  { %1023 = vmatprep.subr.bf16.mxu0 %v1082_v7 }
 0x27e   :  { %1024 = vmatpush3.bf16.msra.mxu0 %v1082_v7  ;;  %v45_v7 = vld [vmem:[%s1365_s3 + $0x8] sm:$0xf]  ;;  %s1133_s3 = smov 64  }
 0x27f   :  { %1037 = vmatprep.subr.bf16.mxu0 %v1083_v60  ;;  %v744_v28 = vrot.slane %v45_v7, %v285_v34 }
 0x339   :  { %v1011_v62 = vpop.f32.mrf.mxu0 }
 0x33b   :  { %v343_v63 = vpop.f32.mrf.mxu0 }
 0x33d   :  { %v1012_v0 = vpop.f32.mrf.mxu0 }
 0x33e   :  { %v359_v5 = vpack.c.bf16 %v1012_v0, %v1011_v62 }
 0x33f   :  { %v346_v1 = vpop.f32.mrf.mxu0 }
 0x340   :  { %v358_v4 = vpack.c.bf16 %v346_v1, %v343_v63 }
 0x342   :  { %1017 = vmatprep.mubr.msk.bf16.mxu1 %vm78_vm0, %v358_v4 }
 0x343   :  { %1018 = vmatmul.mubr.msk.bf16.vlgmr.msra.gmra.mxu1 %vm78_vm0, %v359_v5 }
 0x344   :  { %1033 = vmatprep.mubr.msk.bf16.mxu1 %vm78_vm0, %v1208_v2 }
 0x403   :  { %v1019_v9 = vpop.f32.mrf.mxu1 }
 0x404   :  { %v425_v17 = vadd.f32 %v1019_v9, %v363_v10  ;;  %v592_v9 = vrot.slane %v45_v7, %v138_v15  ;;  %v669_v15 = vrot.slane %v45_v7, %v210_v32 }
 0x405   :  { %v416_v11 = vpop.f32.mrf.mxu1 }
 0x406   :  { %v417_v2 = vadd.f32 %v416_v11, %v363_v10  ;;  %v433_v23 = vmax.f32 %v425_v17, 0.0 }
 0x407   :  { %v1020_v12 = vpop.f32.mrf.mxu1 }
 0x408   :  { %v428_v13 = vadd.f32 %v1020_v12, %v363_v10  ;;  %v431_v21 = vmax.f32 %v417_v2, 0.0 }
 0x409   :  { %v419_v18 = vpop.f32.mrf.mxu1 }
 0x40a   :  { %v420_v19 = vadd.f32 %v419_v18, %v363_v10  ;;  %v434_v20 = vmax.f32 %v428_v13, 0.0 }
 0x40c   :  { %v432_v22 = vmax.f32 %v420_v19, 0.0  ;;  %v436_v25 = vpack.c.bf16 %v434_v20, %v433_v23 }
 0x40e   :  { %v435_v24 = vpack.c.bf16 %v432_v22, %v431_v21 }
 0x410   :  { %1025 = vmatprep.mubr.msk.bf16.mxu0 %vm78_vm0, %v435_v24 }
 0x411   :  { %1026 = vmatmul.mubr.msk.bf16.vlgmr.msra.gmra.mxu0 %vm78_vm0, %v436_v25 }
 0x412   :  { %1038 = vmatpush3.bf16.msra.mxu0 %v1083_v60 }
 0x413   :  { %1039 = vmatprep.subr.bf16.mxu0 %v1084_v61 }
 0x416   :  { %1040 = vmatpush3.bf16.msra.mxu0 %v1084_v61 }
 0x417   :  { %1053 = vmatprep.subr.mxu0 %v1132_v26 }
 0x4d1   :  { %v1027_v30 = vpop.f32.mrf.mxu0 }
 0x4d2   :  { %v502_v31 = vadd.f32 %v1027_v30, %v440_v27 }
 0x4d3   :  { %v493_v35 = vpop.f32.mrf.mxu0 }
 0x4d4   :  { %v510_v36 = vmax.f32 %v502_v31, 0.0  ;;  %v494_v37 = vadd.f32 %v493_v35, %v440_v27  ;;  %v752_v31 = vrot.slane %v45_v7, %v293_v40 }
 0x4d5   :  { %v1028_v39 = vpop.f32.mrf.mxu0 }
 0x4d6   :  { %v518_v41 = vmul.f32 %v515_v33, %v510_v36  ;;  %v508_v42 = vmax.f32 %v494_v37, 0.0  ;;  %v505_v43 = vadd.f32 %v1028_v39, %v440_v27 }
 0x4d7   :  { %v496_v44 = vpop.f32.mrf.mxu0 }
 0x4d8   :  { %v511_v45 = vmax.f32 %v505_v43, 0.0  ;;  %v497_v46 = vadd.f32 %v496_v44, %v440_v27  ;;  %v526_v47 = vadd.f32 %v523_v38, %v518_v41  ;;  %v516_v48 = vmul.f32 %v515_v33, %v508_v42 }
 0x4da   :  { %v519_v49 = vmul.f32 %v515_v33, %v511_v45  ;;  %v509_v50 = vmax.f32 %v497_v46, 0.0  ;;  %765 = vrot.lane.b32.xlu1 %v526_v47, %s1131_s7  ;;  %v1296_v55 = vadd.f32 %v523_v38, %v516_v48 }
 0x4dc   :  { %v517_v51 = vmul.f32 %v515_v33, %v509_v50  ;;  %v527_v52 = vadd.f32 %v523_v38, %v519_v49 }
 0x4de   :  { %v1298_v58 = vadd.f32 %v523_v38, %v517_v51  ;;  %767 = vrot.lane.b32.xlu0 %v527_v52, %s1131_s7  ;;  %v529_v16 = vpack.c.bf16 %v527_v52, %v526_v47 }
 0x4e0   :  { %1029 = vmatprep.subr.bf16.mxu1 %v529_v16  ;;  %v528_v59 = vpack.c.bf16 %v1298_v58, %v1296_v55 }
 0x4e1   :  { %1030 = vmatpush3.bf16.msra.mxu1 %v529_v16 }
 0x4e2   :  { %1031 = vmatprep.subr.bf16.mxu1 %v528_v59 }
 0x4e5   :  { %1032 = vmatpush3.bf16.msra.mxu1 %v528_v59 }
 0x4e8   :  { %1034 = vmatmul.mubr.msk.bf16.vlgmr.msra.gmra.mxu1 %vm78_vm0, %v1215_v3  ;;  %v1085_v3 = vld [vmem:[%s1371_s9 + $0x8] sm:$0xff]  }
 0x4e9   :  { %1045 = vmatprep.subr.bf16.mxu1 %v1085_v3 }
 0x4ea   :  { %1046 = vmatpush3.bf16.msra.mxu1 %v1085_v3 }
 0x4eb   :  { %1047 = vmatprep.subr.bf16.mxu1 %v1086_v6 }
 0x4ee   :  { %1048 = vmatpush3.bf16.msra.mxu1 %v1086_v6 }
 0x54c   :  { %v766_v47 = vpop.permute.xlu1 %765 }
 0x54d   :  { %v791_v48 = vsel %vm78_vm0, %v1255_v53, %v766_v47 }
 0x550   :  { %v768_v49 = vpop.permute.xlu0 %767 }
 0x551   :  { %v792_v52 = vsel %vm78_vm0, %v1257_v54, %v768_v49 }
 0x5a8   :  { %v1035_v62 = vpop.f32.mrf.mxu1 }
 0x5aa   :  { %v572_v63 = vpop.f32.mrf.mxu1 }
 0x5ac   :  { %v1036_v0 = vpop.f32.mrf.mxu1 }
 0x5ad   :  { %v588_v5 = vpack.c.bf16 %v1036_v0, %v1035_v62 }
 0x5ae   :  { %v575_v1 = vpop.f32.mrf.mxu1 }
 0x5af   :  { %v587_v4 = vpack.c.bf16 %v575_v1, %v572_v63  ;;  %v803_v63 = vld [vmem:[%s1364_s2] sm:$0xf] }
 0x5b1   :  { %1041 = vmatprep.mubr.msk.bf16.mxu0 %vm78_vm0, %v587_v4 }
 0x5b2   :  { %1042 = vmatmul.mubr.msk.bf16.vlgmr.msra.gmra.mxu0 %vm78_vm0, %v588_v5 }
 0x5b3   :  { %1061 = vmatprep.mubr.msk.f32.mxu0 %vm1134_vm2, %v1132_v26 }
 0x672   :  { %v1043_v8 = vpop.f32.mrf.mxu0 }
 0x673   :  { %v654_v13 = vadd.f32 %v1043_v8, %v592_v9 }
 0x674   :  { %v645_v10 = vpop.f32.mrf.mxu0 }
 0x675   :  { %v646_v12 = vadd.f32 %v645_v10, %v592_v9  ;;  %v662_v22 = vmax.f32 %v654_v13, 0.0 }
 0x676   :  { %v1044_v11 = vpop.f32.mrf.mxu0 }
 0x677   :  { %v657_v2 = vadd.f32 %v1044_v11, %v592_v9  ;;  %v660_v20 = vmax.f32 %v646_v12, 0.0 }
 0x678   :  { %v648_v17 = vpop.f32.mrf.mxu0 }
 0x679   :  { %v649_v18 = vadd.f32 %v648_v17, %v592_v9  ;;  %v663_v19 = vmax.f32 %v657_v2, 0.0 }
 0x67b   :  { %v661_v21 = vmax.f32 %v649_v18, 0.0  ;;  %v665_v24 = vpack.c.bf16 %v663_v19, %v662_v22 }
 0x67d   :  { %v664_v23 = vpack.c.bf16 %v661_v21, %v660_v20 }
 0x67f   :  { %1049 = vmatprep.mubr.msk.bf16.mxu1 %vm78_vm0, %v664_v23 }
 0x680   :  { %1050 = vmatmul.mubr.msk.bf16.vlgmr.msra.gmra.mxu1 %vm78_vm0, %v665_v24 }
 0x740   :  { %v1051_v25 = vpop.f32.mrf.mxu1 }
 0x741   :  { %v731_v27 = vadd.f32 %v1051_v25, %v669_v15 }
 0x742   :  { %v722_v29 = vpop.f32.mrf.mxu1 }
 0x743   :  { %v739_v30 = vmax.f32 %v731_v27, 0.0  ;;  %v723_v36 = vadd.f32 %v722_v29, %v669_v15 }
 0x744   :  { %v1052_v33 = vpop.f32.mrf.mxu1 }
 0x745   :  { %v747_v35 = vmul.f32 %v744_v28, %v739_v30  ;;  %v734_v37 = vadd.f32 %v1052_v33, %v669_v15  ;;  %v737_v42 = vmax.f32 %v723_v36, 0.0 }
 0x746   :  { %v725_v38 = vpop.f32.mrf.mxu1 }
 0x747   :  { %v740_v39 = vmax.f32 %v734_v37, 0.0  ;;  %v726_v41 = vadd.f32 %v725_v38, %v669_v15  ;;  %v755_v32 = vadd.f32 %v752_v31, %v747_v35  ;;  %v745_v46 = vmul.f32 %v744_v28, %v737_v42 }
 0x749   :  { %v748_v43 = vmul.f32 %v744_v28, %v740_v39  ;;  %v738_v44 = vmax.f32 %v726_v41, 0.0  ;;  %781 = vrot.lane.b32.xlu1 %v755_v32, %s1133_s3  ;;  %v753_v40 = vadd.f32 %v752_v31, %v745_v46 }
 0x74b   :  { %v746_v34 = vmul.f32 %v744_v28, %v738_v44  ;;  %v756_v45 = vadd.f32 %v752_v31, %v748_v43 }
 0x74d   :  { %783 = vrot.lane.b32.xlu0 %v756_v45, %s1133_s3  ;;  %v754_v14 = vadd.f32 %v752_v31, %v746_v34 }
 0x74f   :  { %779 = vrot.lane.b32.xlu1 %v754_v14, %s1133_s3 }
 0x751   :  { %763 = vrot.lane.b32.xlu0 %v1298_v58, %s1131_s7 }
 0x753   :  { %777 = vrot.lane.b32.xlu1 %v753_v40, %s1133_s3 }
 0x755   :  { %761 = vrot.lane.b32.xlu0 %v1296_v55, %s1131_s7 }
 0x7bb   :  { %v782_v50 = vpop.permute.xlu1 %781 }
 0x7bc   :  { %v796_v51 = vsel %vm793_vm3, %v791_v48, %v782_v50 }
 0x7bd   :  { %801 = vst.msk [vmem:[#allocation2 + $0x10] sm:$0xff] %vm798_vm4, %v796_v51 }
 0x7bf   :  { %v784_v58 = vpop.permute.xlu0 %783 }
 0x7c0   :  { %v797_v16 = vsel %vm793_vm3, %v792_v52, %v784_v58 }
 0x7c1   :  { %802 = vst.msk [vmem:[#allocation2 + $0x18] sm:$0xff] %vm798_vm4, %v797_v16  ;;  %1054 = vmatpush3.msra.mxu0 %v797_v16  ;;  %v780_v55 = vpop.permute.xlu1 %779 }
 0x7c2   :  { %1055 = vmatprep.subr.mxu0 %v1132_v26 }
 0x7c3   :  { %1056 = vmatpush3.msra.mxu0 %v796_v51  ;;  %v764_v59 = vpop.permute.xlu0 %763 }
 0x7c4   :  { %v790_v53 = vsel %vm78_vm0, %v1261_v57, %v764_v59  ;;  %1057 = vmatprep.subr.mxu0 %v1132_v26 }
 0x7c5   :  { %v795_v60 = vsel %vm793_vm3, %v790_v53, %v780_v55  ;;  %v778_v61 = vpop.permute.xlu1 %777 }
 0x7c6   :  { %800 = vst.msk [vmem:[#allocation2 + $0x8] sm:$0xff] %vm798_vm4, %v795_v60  ;;  %1058 = vmatpush3.msra.mxu0 %v795_v60 }
 0x7c7   :  { %v762_v54 = vpop.permute.xlu0 %761  ;;  %1059 = vmatprep.subr.mxu0 %v1132_v26 }
 0x7c8   :  { %v789_v62 = vsel %vm78_vm0, %v1259_v56, %v762_v54 }
 0x7c9   :  { %v794_v0 = vsel %vm793_vm3, %v789_v62, %v778_v61 }
 0x7ca   :  { %799 = vst.msk [vmem:[#allocation2] sm:$0xff] %vm798_vm4, %v794_v0  ;;  %1060 = vmatpush3.msra.mxu0 %v794_v0 }
 0x7cb   :  { %1062 = vmatmul.mubr.msk.f32.vlgmr.msra.gmra.mxu0 %vm78_vm0, %v803_v63 }
 0x7cc   :  { %1098 = shalt.err (!%p1095_p4)
}
 0x7cd   :  { %s1136_s28 = smov 128   ;;  %s1137_s4 = smov 8   ;;  %vm877_vm5 = vcmask 781312  }
 0x7ce   :  { %890 = dma.vmem_to_hbm [thread:$0]  %s885_s26, 512, %s1372_s10, [#allocation3], %s1136_s28, %s1136_s28, %s1137_s4  }
 0x7cf   :  { %s1138_s5 = smov [#allocation4]  }
 0x7d0   :  { %s897_s30 = sshll.u32 %s1138_s5, 4  ;;  %s898_s30 = int_to_ptr.vmem [resolvable:$true] %s897_s30 }
 0x7d1   :  { %s1107_s12 = scalar_lea.vmem %s898_s30, 64  ;;  %p1112_p6 = scmp.lt.s32.totalorder %s898_s30, %s898_s30 }
 0x7d2   :  { %p1108_p5 = scmp.ne.s32.totalorder %s898_s30, %s1107_s12  ;;  %p1113_p7 = scmp.lt.s32.totalorder %s1107_s12, %s1107_s12 }
 0x7d4   :  { %p1114_p8 = por %p1113_p7, %p1112_p6 }
 0x7d6   :  { %p1115_p9 = pnand %p1114_p8, %p1108_p5 }
 0x88b   :  { %v873_v56 = vpop.f32.mrf.mxu0 }
 0x88c   :  { %878 = vst.msk [vmem:[#allocation4] sm:$0xf] %vm877_vm5, %v873_v56 }
 0x88d   :  { %v1063_v57 = vpop.f32.mrf.mxu0 }
 0x88e   :  { %1118 = shalt.err (!%p1115_p9)
}
 0x88f   :  { %900 = dma.vmem_to_hbm [thread:$0]  %s898_s30, 64, %s1373_s11, [#allocation5]  }
 0x890   :  { %1127 = dma.done.wait [#allocation3], 512  }
 0x891   :  { %1128 = vsyncadd [#allocation3], 4294966784 }
 0x892   :  { %1129 = dma.done.wait [#allocation5], 64  }
 0x893   :  { %1130 = vsyncadd [#allocation5], 4294967232 }
 0x894   :  { %907 = vsyncpa [#allocation3], 1 }
 0x895   :  { %908 = vsyncpa [#allocation5], 1 }

</bundles_post_ra>
